<compile_context>
chip_gen: v7x
topology: tpu7x:2x2x1
jax: 0.10.0
libtpu: 0.0.40
codegen_flags: <defaults>
</compile_context>

<pallas_src>
import jax
import jax.numpy as jnp
from jax.experimental import pallas as pl
from jax.experimental.pallas import tpu as pltpu

IN_DIM = 27
HID_DIM = 27
OUT_DIM = 512


def _fc_kernel(x_ref, w1_ref, b1_ref, w2_ref, b2_ref, o_ref):
    # Hidden layer: [TB, 27] @ [27, 27] + [1, 27] -> ReLU  (f32 accumulation)
    h = jnp.dot(x_ref[...], w1_ref[...], preferred_element_type=jnp.float32)
    h = jnp.maximum(h + b1_ref[...], 0.0)
    # Output layer: [TB, 27] @ [27, 512] + [1, 512] -> ReLU
    y = jnp.dot(h, w2_ref[...], preferred_element_type=jnp.float32)
    o_ref[...] = jnp.maximum(y + b2_ref[...], 0.0).astype(o_ref.dtype)


def simple_fcs_v2(x, w1, b1, w2, b2, *, block_batch=1024):
    """x: [..., 27]; w1: [27, 27]; b1: [1, 27]; w2: [27, 512]; b2: [1, 512]."""
    lead_shape = x.shape[:-1]
    x2d = x.reshape(-1, x.shape[-1])
    B, in_dim = x2d.shape
    hid_dim = w1.shape[1]
    out_dim = w2.shape[1]

    # Batch tile: big enough to hit the HBM roofline, small enough for VMEM.
    # Keep it sublane-aligned (multiple of 8) when we are actually tiling;
    # when B < block_batch a single full-batch block is always legal.
    if B <= block_batch:
        tb = B
    else:
        tb = max(8, (block_batch // 8) * 8)
    grid = (pl.cdiv(B, tb),)

    flops = 2 * B * (in_dim * hid_dim + hid_dim * out_dim)
    bytes_accessed = 4 * (
        x2d.size + w1.size + b1.size + w2.size + b2.size + B * out_dim
    )

    out = pl.pallas_call(
        _fc_kernel,
        out_shape=jax.ShapeDtypeStruct((B, out_dim), jnp.float32),
        grid=grid,
        in_specs=[
            # x: streamed per batch tile (auto double-buffered).
            pl.BlockSpec((tb, in_dim), lambda i: (i, 0)),
            # Weights / biases: constant index_map -> VMEM-resident across steps.
            pl.BlockSpec((in_dim, hid_dim), lambda i: (0, 0)),
            pl.BlockSpec((1, hid_dim), lambda i: (0, 0)),
            pl.BlockSpec((hid_dim, out_dim), lambda i: (0, 0)),
            pl.BlockSpec((1, out_dim), lambda i: (0, 0)),
        ],
        out_specs=pl.BlockSpec((tb, out_dim), lambda i: (i, 0)),
        compiler_params=pltpu.CompilerParams(
            # Independent batch tiles: shard across TensorCores on v7x.
            dimension_semantics=("parallel",),
        ),
        cost_estimate=pl.CostEstimate(
            flops=flops, transcendentals=0, bytes_accessed=bytes_accessed
        ),
    )(x2d, w1, b1, w2, b2)

    return out.reshape(*lead_shape, out_dim)


def init_params(key):
    """Deterministic parameter init matching nn.Linear shapes.

    PyTorch stores Linear weight as [out, in]; we keep the transposed
    [in, out] layout so the kernel does plain x @ W."""
    k1, k2, k3, k4 = jax.random.split(key, 4)
    # Uniform(-1/sqrt(fan_in), 1/sqrt(fan_in)) like PyTorch's default init.
    lim1 = 1.0 / jnp.sqrt(float(IN_DIM))
    w1 = jax.random.uniform(k1, (IN_DIM, HID_DIM), jnp.float32, -lim1, lim1)
    b1 = jax.random.uniform(k2, (1, HID_DIM), jnp.float32, -lim1, lim1)
    lim2 = 1.0 / jnp.sqrt(float(HID_DIM))
    w2 = jax.random.uniform(k3, (HID_DIM, OUT_DIM), jnp.float32, -lim2, lim2)
    b2 = jax.random.uniform(k4, (1, OUT_DIM), jnp.float32, -lim2, lim2)
    return w1, b1, w2, b2


def _reference(x, w1, b1, w2, b2):
    h = jnp.maximum(x @ w1 + b1, 0.0)
    return jnp.maximum(h @ w2 + b2, 0.0)


if __name__ == "__main__":
    key = jax.random.PRNGKey(0)
    k_x, k_x2, k_p = jax.random.split(key, 3)

    w1, b1, w2, b2 = init_params(k_p)

    # Small smoke test (single grid step, full-batch block).
    batch = 8
    x = jax.random.normal(k_x, (batch, IN_DIM), dtype=jnp.float32)
    out = jax.block_until_ready(simple_fcs_v2(x, w1, b1, w2, b2))
    ref = _reference(x, w1, b1, w2, b2)
    assert out.shape == (batch, OUT_DIM), out.shape
    assert jnp.allclose(out, ref, atol=1e-5, rtol=1e-5)

    # Exercise the batch grid: multiple tiles + a partial last tile.
    batch2 = 300
    x2 = jax.random.normal(k_x2, (batch2, IN_DIM), dtype=jnp.float32)
    out2 = jax.block_until_ready(
        simple_fcs_v2(x2, w1, b1, w2, b2, block_batch=128)
    )
    ref2 = _reference(x2, w1, b1, w2, b2)
    assert out2.shape == (batch2, OUT_DIM), out2.shape
    assert jnp.allclose(out2, ref2, atol=1e-5, rtol=1e-5)

    print("KERNEL_OK")
</pallas_src>

<mosaic_0001>
module attributes {stable_mosaic.version = 11 : i64} {
  func.func @_fc_kernel(%arg0: i32, %arg1: memref<8x27xf32, #tpu.memory_space<vmem>>, %arg2: memref<27x27xf32, #tpu.memory_space<vmem>>, %arg3: memref<1x27xf32, #tpu.memory_space<vmem>>, %arg4: memref<27x512xf32, #tpu.memory_space<vmem>>, %arg5: memref<1x512xf32, #tpu.memory_space<vmem>>, %arg6: memref<8x512xf32, #tpu.memory_space<vmem>>) attributes {dimension_semantics = [#tpu.dimension_semantics<parallel>], iteration_bounds = array<i64: 1>, scalar_prefetch = 0 : i64, scratch_operands = 0 : i64, tpu.core_type = #tpu.core_type<tc>, window_params = [{transform_indices = @transform_0, window_bounds = array<i64: 8, 27>}, {pipeline_mode = #tpu.pipeline_mode<synchronous>, transform_indices = @transform_1, window_bounds = array<i64: 27, 27>}, {pipeline_mode = #tpu.pipeline_mode<synchronous>, transform_indices = @transform_2, window_bounds = array<i64: 1, 27>}, {pipeline_mode = #tpu.pipeline_mode<synchronous>, transform_indices = @transform_3, window_bounds = array<i64: 27, 512>}, {pipeline_mode = #tpu.pipeline_mode<synchronous>, transform_indices = @transform_4, window_bounds = array<i64: 1, 512>}, {transform_indices = @transform_5, window_bounds = array<i64: 8, 512>}]} {
    %c0 = arith.constant 0 : index
    %c0_0 = arith.constant 0 : index
    %0 = vector.load %arg1[%c0, %c0_0] : memref<8x27xf32, #tpu.memory_space<vmem>>, vector<8x27xf32>
    %c0_1 = arith.constant 0 : index
    %c0_2 = arith.constant 0 : index
    %1 = vector.load %arg2[%c0_1, %c0_2] : memref<27x27xf32, #tpu.memory_space<vmem>>, vector<27x27xf32>
    %cst = arith.constant dense<0.000000e+00> : vector<8x27xf32>
    %2 = tpu.matmul %0, %1, %cst {dimension_numbers = #tpu.dot_dimension_numbers<[1], [0], [0], [1], [0, 0, 1, 1], [], []>} : vector<8x27xf32>, vector<27x27xf32>, vector<8x27xf32> -> vector<8x27xf32>
    %c0_3 = arith.constant 0 : index
    %c0_4 = arith.constant 0 : index
    %3 = vector.load %arg3[%c0_3, %c0_4] : memref<1x27xf32, #tpu.memory_space<vmem>>, vector<1x27xf32>
    %4 = vector.broadcast %3 : vector<1x27xf32> to vector<8x27xf32>
    %5 = arith.addf %2, %4 : vector<8x27xf32>
    %cst_5 = arith.constant 0.000000e+00 : f32
    %6 = vector.broadcast %cst_5 : f32 to vector<8x27xf32>
    %7 = arith.maximumf %5, %6 : vector<8x27xf32>
    %c0_6 = arith.constant 0 : index
    %c0_7 = arith.constant 0 : index
    %8 = vector.load %arg4[%c0_6, %c0_7] : memref<27x512xf32, #tpu.memory_space<vmem>>, vector<27x512xf32>
    %cst_8 = arith.constant dense<0.000000e+00> : vector<8x512xf32>
    %9 = tpu.matmul %7, %8, %cst_8 {dimension_numbers = #tpu.dot_dimension_numbers<[1], [0], [0], [1], [0, 0, 1, 1], [], []>} : vector<8x27xf32>, vector<27x512xf32>, vector<8x512xf32> -> vector<8x512xf32>
    %c0_9 = arith.constant 0 : index
    %c0_10 = arith.constant 0 : index
    %10 = vector.load %arg5[%c0_9, %c0_10] : memref<1x512xf32, #tpu.memory_space<vmem>>, vector<1x512xf32>
    %11 = vector.broadcast %10 : vector<1x512xf32> to vector<8x512xf32>
    %12 = arith.addf %9, %11 : vector<8x512xf32>
    %cst_11 = arith.constant 0.000000e+00 : f32
    %13 = vector.broadcast %cst_11 : f32 to vector<8x512xf32>
    %14 = arith.maximumf %12, %13 : vector<8x512xf32>
    %c0_12 = arith.constant 0 : index
    %c0_13 = arith.constant 0 : index
    %15 = vector.load %arg6[%c0_12, %c0_13] : memref<8x512xf32, #tpu.memory_space<vmem>>, vector<8x512xf32>
    tpu.vector_store %arg6[%c0_12, %c0_13], %14 {strides = array<i32>} : memref<8x512xf32, #tpu.memory_space<vmem>>, vector<8x512xf32>,
    return
  }
  func.func @transform_0(%arg0: i32) -> (i32, i32) {
    %c0_i32 = arith.constant 0 : i32
    %c0_i32_0 = arith.constant 0 : i32
    return %arg0, %c0_i32 : i32, i32
  }
  func.func @transform_1(%arg0: i32) -> (i32, i32) {
    %c0_i32 = arith.constant 0 : i32
    %c0_i32_0 = arith.constant 0 : i32
    %c0_i32_1 = arith.constant 0 : i32
    return %c0_i32, %c0_i32_0 : i32, i32
  }
  func.func @transform_2(%arg0: i32) -> (i32, i32) {
    %c0_i32 = arith.constant 0 : i32
    %c0_i32_0 = arith.constant 0 : i32
    %c0_i32_1 = arith.constant 0 : i32
    return %c0_i32, %c0_i32_0 : i32, i32
  }
  func.func @transform_3(%arg0: i32) -> (i32, i32) {
    %c0_i32 = arith.constant 0 : i32
    %c0_i32_0 = arith.constant 0 : i32
    %c0_i32_1 = arith.constant 0 : i32
    return %c0_i32, %c0_i32_0 : i32, i32
  }
  func.func @transform_4(%arg0: i32) -> (i32, i32) {
    %c0_i32 = arith.constant 0 : i32
    %c0_i32_0 = arith.constant 0 : i32
    %c0_i32_1 = arith.constant 0 : i32
    return %c0_i32, %c0_i32_0 : i32, i32
  }
  func.func @transform_5(%arg0: i32) -> (i32, i32) {
    %c0_i32 = arith.constant 0 : i32
    %c0_i32_0 = arith.constant 0 : i32
    return %arg0, %c0_i32 : i32, i32
  }
}

</mosaic_0001>

<bundles_post_ra>
// kernel: tpu_custom_call.1
= control target key start
LH: loop header
LB: loop body
LE: loop exit
PB: predicated region body
PF: predicated region fallthrough
CT: control target
= control target key end

     0   :  { %10 = vsyncpa [#allocation3], 0  ;;  %s641_s0 = inlined_call_operand.hbm [shape: f32[8,27], index: 0, kind: input, shape index: {}]   ;;  %s642_s1 = inlined_call_operand.hbm [shape: f32[27,27], index: 1, kind: input, shape index: {}]   ;;  %s643_s2 = inlined_call_operand.vmem [shape: f32[1,27], index: 2, kind: input, shape index: {}]   ;;  %s644_s3 = inlined_call_operand.hbm [shape: f32[27,512], index: 3, kind: input, shape index: {}]   ;;  %s645_s4 = inlined_call_operand.vmem [shape: f32[1,512], index: 4, kind: input, shape index: {}]   ;;  %s646_s5 = inlined_call_operand.hbm [shape: f32[8,512], index: 5, kind: output, shape index: {}]  }
   0x1   :  { %11 = vsyncpa [#allocation6], 0 }
   0x2   :  { %12 = vsyncpa [#allocation4], 0  ;;  %s528_s18 = smov [#allocation5]   ;;  %s434_s22 = scalar_lea.hbm %s642_s1, 512 }
   0x3   :  { %s28_s19 = sshll.u32 %s528_s18, 4  ;;  %p435_p0 = scmp.ne.s32.totalorder %s642_s1, %s434_s22  ;;  %s29_s19 = int_to_ptr.vmem [resolvable:$true] %s28_s19 }
   0x4   :  { %p438_p1 = scmp.lt.u32.totalorder %s434_s22, %s642_s1 }
   0x6   :  { %p440_p2 = pnand %p438_p1, %p435_p0 }
   0x8   :  { %443 = shalt.err (!%p440_p2)
}
   0x9   :  { %s444_s27 = scalar_lea.vmem %s29_s19, 512  ;;  %p449_p4 = scmp.lt.s32.totalorder %s29_s19, %s29_s19 }
   0xa   :  { %p445_p3 = scmp.ne.s32.totalorder %s29_s19, %s444_s27  ;;  %p450_p5 = scmp.lt.s32.totalorder %s444_s27, %s444_s27 }
   0xc   :  { %p451_p6 = por %p450_p5, %p449_p4 }
   0xe   :  { %p452_p7 = pnand %p451_p6, %p445_p3 }
  0x10   :  { %455 = shalt.err (!%p452_p7)
}
  0x11   :  { %s529_s28 = smov 128   ;;  %s530_s29 = smov 8  }
  0x12   :  { %34 = dma.hbm_to_vmem [thread:$0]  %s642_s1, 512, %s29_s19, [#allocation6], %s529_s28, %s529_s28, %s530_s29  }
  0x13   :  { %s531_s7 = smov [#allocation2]   ;;  %s532_s9 = smov [#allocation7]  }
  0x14   :  { %s19_s8 = sshll.u32 %s531_s7, 4  ;;  %s42_s10 = sshll.u32 %s532_s9, 4  ;;  %s20_s8 = int_to_ptr.vmem [resolvable:$true] %s19_s8  ;;  %s43_s10 = int_to_ptr.vmem [resolvable:$true] %s42_s10 }
  0x15   :  { %s456_s13 = scalar_lea.hbm %s641_s0, 128 }
  0x16   :  { %p457_p8 = scmp.ne.s32.totalorder %s641_s0, %s456_s13  ;;  %p460_p9 = scmp.lt.u32.totalorder %s456_s13, %s641_s0 }
  0x18   :  { %p462_p10 = pnand %p460_p9, %p457_p8 }
  0x1a   :  { %465 = shalt.err (!%p462_p10)
}
  0x1b   :  { %s466_s1 = scalar_lea.vmem %s20_s8, 128  ;;  %p471_p12 = scmp.lt.s32.totalorder %s20_s8, %s20_s8 }
  0x1c   :  { %p467_p11 = scmp.ne.s32.totalorder %s20_s8, %s466_s1  ;;  %p472_p13 = scmp.lt.s32.totalorder %s466_s1, %s466_s1 }
  0x1e   :  { %p473_p0 = por %p472_p13, %p471_p12 }
  0x20   :  { %p474_p1 = pnand %p473_p0, %p467_p11 }
  0x22   :  { %477 = shalt.err (!%p474_p1)
}
  0x23   :  { %22 = dma.hbm_to_vmem [thread:$0]  %s641_s0, 128, %s20_s8, [#allocation3]  }
  0x24   :  { %s478_s22 = scalar_lea.hbm %s644_s3, 2048 }
  0x25   :  { %p479_p2 = scmp.ne.s32.totalorder %s644_s3, %s478_s22  ;;  %p482_p3 = scmp.lt.u32.totalorder %s478_s22, %s644_s3 }
  0x27   :  { %p484_p4 = pnand %p482_p3, %p479_p2 }
  0x29   :  { %487 = shalt.err (!%p484_p4)
}
  0x2a   :  { %s488_s27 = scalar_lea.vmem %s43_s10, 2048  ;;  %p493_p6 = scmp.lt.s32.totalorder %s43_s10, %s43_s10 }
  0x2b   :  { %p489_p5 = scmp.ne.s32.totalorder %s43_s10, %s488_s27  ;;  %p494_p7 = scmp.lt.s32.totalorder %s488_s27, %s488_s27 }
  0x2d   :  { %p495_p8 = por %p494_p7, %p493_p6 }
  0x2f   :  { %p496_p9 = pnand %p495_p8, %p489_p5 }
  0x31   :  { %499 = shalt.err (!%p496_p9)
}
  0x32   :  { %s533_s0 = smov 512   ;;  %s534_s28 = smov 32  }
  0x33   :  { %48 = dma.hbm_to_vmem [thread:$0]  %s644_s3, 2048, %s43_s10, [#allocation6], %s533_s0, %s533_s0, %s534_s28  }
  0x34   :  { %522 = dma.done.wait [#allocation3], 128  }
  0x35   :  { %523 = vsyncadd [#allocation3], 4294967168 }
  0x36   :  { %524 = dma.done.wait [#allocation6], 2560  }
  0x37   :  { %525 = vsyncadd [#allocation6], 4294964736  ;;  %v535_v0 = vmov 0.0|0.0   ;;  %vm536_vm0 = vmmov 0   ;;  %v537_v1 = vmov 0.0   ;;  %v61_v2 = vld [vmem:[#allocation5] sm:$0xff]  ;;  %v169_v39 = vlaneseq }
  0x38   :  { %395 = vmatprep.subr.bf16.mxu0 %v535_v0  ;;  %392 = vmatprep.mubr.msk.f32.mxu0 %vm536_vm0, %v537_v1  ;;  %v62_v3 = vld [vmem:[#allocation5 + $0x8] sm:$0xff]  ;;  %v63_v4 = vld [vmem:[#allocation5 + $0x10] sm:$0xff]  ;;  %v64_v6 = vld [vmem:[#allocation5 + $0x18] sm:$0x7]  ;;  %vm76_vm1 = vcmask 1042432   ;;  %vm538_vm2 = vmmov 1  }
  0x39   :  { %268 = vmatprep.mubr.f32.mxu1 %v537_v1  ;;  %v396_v5 = vpack.c.bf16 %v62_v3, %v61_v2  ;;  %v152_v7 = vld [vmem:[#allocation7 + $0x8] sm:$0xff]  ;;  %v154_v9 = vld [vmem:[#allocation7 + $0x18] sm:$0xff]  ;;  %v399_v11 = vpack.c.bf16 %v64_v6, %v63_v4  ;;  %v151_v13 = vld [vmem:[#allocation7] sm:$0xff]  ;;  %vm72_vm4 = vcmask 220160   ;;  %v170_v40 = vshrl.u32 %v169_v39, 7 }
  0x3a   :  { %v156_v8 = vld [vmem:[#allocation7 + $0x28] sm:$0xff]  ;;  %v158_v10 = vld [vmem:[#allocation7 + $0x38] sm:$0xff]  ;;  %v155_v14 = vld [vmem:[#allocation7 + $0x20] sm:$0xff] }
  0x3b   :  { %397 = vmatpush3.bf16.msra.mxu0 %v396_v5  ;;  %v402_v12 = vpack.c.bf16 %v156_v8, %v152_v7  ;;  %vm606_vm3 = vmpackc.low %vm76_vm1, %vm538_vm2  ;;  %v412_v16 = vpack.c.bf16 %v158_v10, %v154_v9  ;;  %v404_v17 = vpack.c.bf16 %v155_v14, %v151_v13  ;;  %v153_v18 = vld [vmem:[#allocation7 + $0x10] sm:$0xff]  ;;  %v60_v20 = vld [vmem:[#allocation2] sm:$0xff]  ;;  %v171_v41 = vsub.s32 0, %v170_v40 }
  0x3c   :  { %398 = vmatprep.subr.bf16.mxu0 %v535_v0  ;;  %v157_v19 = vld [vmem:[#allocation7 + $0x30] sm:$0xff]  ;;  %v160_v22 = vld [vmem:[#allocation7 + $0x48] sm:$0xff]  ;;  %v162_v24 = vld [vmem:[#allocation7 + $0x58] sm:$0xff]  ;;  %v179_v42 = vsub.s32 2, %v170_v40  ;;  %v175_v44 = vsub.s32 1, %v170_v40  ;;  %v183_v45 = vsub.s32 3, %v170_v40 }
  0x3d   :  { %403 = vmatprep.subr.bf16.mxu1 %v402_v12  ;;  %v414_v21 = vpack.c.bf16 %v157_v19, %v153_v18  ;;  %v164_v23 = vld [vmem:[#allocation7 + $0x68] sm:$0x7]  ;;  %v166_v26 = vld [vmem:[#allocation7 + $0x78] sm:$0x7]  ;;  %v159_v27 = vld [vmem:[#allocation7 + $0x40] sm:$0xff] }
  0x3e   :  { %405 = vmatpush1.bf16.msra.mxu1 %v404_v17  ;;  %v406_v25 = vpack.c.bf16 %v164_v23, %v160_v22  ;;  %v163_v28 = vld [vmem:[#allocation7 + $0x60] sm:$0x7]  ;;  %v416_v29 = vpack.c.bf16 %v166_v26, %v162_v24  ;;  %v161_v31 = vld [vmem:[#allocation7 + $0x50] sm:$0xff]  ;;  %v370_v34 = vld [vmem:[%s643_s2] ss:$0 sm:$0xff]  ;;  %s539_s2 = smov [#allocation8]  }
  0x3f   :  { %401 = vmatpush3.bf16.msk.msra.mxu0 %vm606_vm3, %v399_v11  ;;  %v409_v30 = vpack.c.bf16 %v163_v28, %v159_v27  ;;  %v165_v32 = vld [vmem:[#allocation7 + $0x70] sm:$0x7]  ;;  %v167_v43 = vld [vmem:[%s645_s4] sm:$0xf]  ;;  %s360_s9 = sshll.u32 %s539_s2, 4  ;;  %s361_s9 = int_to_ptr.vmem [resolvable:$true] %s360_s9 }
  0x40   :  { %413 = vmatprep.subr.bf16.mxu0 %v412_v16  ;;  %408 = vmatprep.subr.msk.bf16.mxu1 %vm606_vm3, %v406_v25  ;;  %v419_v33 = vpack.c.bf16 %v165_v32, %v161_v31  ;;  %v172_v46 = vrot.slane %v167_v43, %v171_v41  ;;  %v180_v47 = vrot.slane %v167_v43, %v179_v42  ;;  %s500_s4 = scalar_lea.vmem %s361_s9, 512  ;;  %p505_p11 = scmp.lt.s32.totalorder %s361_s9, %s361_s9 }
  0x41   :  { %v176_v48 = vrot.slane %v167_v43, %v175_v44  ;;  %v184_v49 = vrot.slane %v167_v43, %v183_v45  ;;  %p501_p10 = scmp.ne.s32.totalorder %s361_s9, %s500_s4  ;;  %p506_p12 = scmp.lt.s32.totalorder %s500_s4, %s500_s4 }
  0x42   :  { %393 = vmatmul.mubr.msk.f32.vlgmr.msra.gmra.mrb[0].mxu0 %vm72_vm4, %v60_v20  ;;  %411 = vmatpush1.bf16.msk.msra.mxu1 %vm606_vm3, %v409_v30 }
  0x43   :  { %415 = vmatpush1.bf16.msra.mxu0 %v414_v21  ;;  %339 = vmatprep.mubr.f32.mxu0 %v537_v1  ;;  %p507_p13 = por %p506_p12, %p505_p11 }
  0x44   :  { %418 = vmatprep.subr.msk.bf16.mxu0 %vm606_vm3, %v416_v29 }
  0x45   :  { %p508_p0 = pnand %p507_p13, %p501_p10 }
  0x47   :  { %421 = vmatpush1.bf16.msk.msra.mxu0 %vm606_vm3, %v419_v33 }
 0x115   :  { %v146_v35 = vpop.f32.mrb[0].mxu0 }
 0x116   :  { %v147_v36 = vadd.f32 %v370_v34, %v146_v35  ;;  %v394_v37 = vpop.f32.mrb[1].mxu0 }
 0x118   :  { %v150_v38 = vmax.f32 %v147_v36, 0.0 }
 0x11a   :  { %375 = vmatmul.mubr.msk.f32.vlgmr.msra.gmra.mrb[0].mxu1 %vm72_vm4, %v150_v38  ;;  %378 = vmatmul.mubr.msk.f32.vlgmr.msra.gmra.mrb[2].mxu0 %vm72_vm4, %v150_v38 }
 0x1ed   :  { %v270_v50 = vpop.f32.mrb[0].mxu1  ;;  %v341_v51 = vpop.f32.mrb[2].mxu0 }
 0x1ee   :  { %v271_v52 = vadd.f32 %v270_v50, %v172_v46  ;;  %v342_v53 = vadd.f32 %v341_v51, %v180_v47  ;;  %v272_v54 = vpop.f32.mrb[1].mxu1  ;;  %v343_v55 = vpop.f32.mrb[3].mxu0 }
 0x1ef   :  { %v273_v56 = vadd.f32 %v272_v54, %v176_v48  ;;  %v344_v57 = vadd.f32 %v343_v55, %v184_v49 }
 0x1f0   :  { %v346_v58 = vmax.f32 %v271_v52, 0.0  ;;  %v348_v59 = vmax.f32 %v342_v53, 0.0 }
 0x1f1   :  { %v347_v60 = vmax.f32 %v273_v56, 0.0  ;;  %v349_v61 = vmax.f32 %v344_v57, 0.0 }
 0x1f2   :  { %350 = vst [vmem:[#allocation8] sm:$0xff] %v346_v58  ;;  %352 = vst [vmem:[#allocation8 + $0x10] sm:$0xff] %v348_v59 }
 0x1f3   :  { %351 = vst [vmem:[#allocation8 + $0x8] sm:$0xff] %v347_v60  ;;  %353 = vst [vmem:[#allocation8 + $0x18] sm:$0xff] %v349_v61 }
 0x1f4   :  { %511 = shalt.err (!%p508_p0)
}
 0x1f5   :  { %s512_s12 = scalar_lea.hbm %s646_s5, 512 }
 0x1f6   :  { %p513_p1 = scmp.ne.s32.totalorder %s646_s5, %s512_s12  ;;  %p516_p2 = scmp.lt.u32.totalorder %s512_s12, %s646_s5 }
 0x1f8   :  { %p518_p3 = pnand %p516_p2, %p513_p1 }
 0x1fa   :  { %521 = shalt.err (!%p518_p3)
}
 0x1fb   :  { %363 = dma.vmem_to_hbm [thread:$0]  %s361_s9, 512, %s646_s5, [#allocation4]  }
 0x1fc   :  { %526 = dma.done.wait [#allocation4], 512  }
 0x1fd   :  { %527 = vsyncadd [#allocation4], 4294966784 }
 0x1fe   :  { %367 = vsyncpa [#allocation3], 1 }
 0x1ff   :  { %368 = vsyncpa [#allocation6], 1 }
 0x200   :  { %369 = vsyncpa [#allocation4], 1 }

</bundles_post_ra>
